<compile_context>
chip_gen: v6e
topology: v6e:2x2x1
jax: 0.10.0
libtpu: 0.0.40
codegen_flags: <defaults>
</compile_context>

<pallas_src>
import jax
import jax.numpy as jnp
from jax.experimental import pallas as pl
from jax.experimental.pallas import tpu as pltpu

EPS = 1e-5       # PyTorch BatchNorm1d default eps
LANE = 128       # TPU lane width
SUBLANE = 8      # f32 sublane count


def _round_up(n, m):
    return (n + m - 1) // m * m


def _pad2(a, rows, cols):
    r, c = a.shape
    return jnp.pad(a, ((0, rows - r), (0, cols - c)))


def _bn_eval(h, gamma, beta, mean, var):
    return (h - mean) * jax.lax.rsqrt(var + EPS) * gamma + beta


# ----------------------------------------------------------------------------
# Wrapper-side parameter preparation: BN folding + 128-padding + fc1/downsample
# fusion + bias packing.  Runs ONCE at build time, not per forward call.
# ----------------------------------------------------------------------------
def pack_params(params, block_has_downsample, input_dim, dot_dtype=jnp.bfloat16):
    """Fold eval-mode BN into the preceding Linear, zero-pad feature dims to
    multiples of 128 lanes, fuse fc1+downsample of each residual block into one
    wide matmul, cast matmul weights to `dot_dtype`, pack all biases into one
    f32 slab.  Returns (weights, bias_slab, plan, d_in_pad, d_out_pad)."""
    it = iter(params)
    weights, biases, widths = [], [], []

    def fold(w, b, g, be, m, v):
        s = g * jax.lax.rsqrt(v + EPS)                 # [1, out]
        return w * s, (b - m) * s + be

    def add(w_list, b_list, k):
        """Pad each (w, b) to [k_pad, n_pad]/[1, n_pad], concat along N."""
        k_pad = _round_up(k, LANE)
        n_pads = [_round_up(w.shape[1], LANE) for w in w_list]
        w_cat = jnp.concatenate(
            [_pad2(w.astype(jnp.float32), k_pad, n) for w, n in zip(w_list, n_pads)],
            axis=1).astype(dot_dtype)
        b_cat = jnp.concatenate(
            [_pad2(b.astype(jnp.float32), 1, n) for b, n in zip(b_list, n_pads)],
            axis=1)
        weights.append(w_cat)
        biases.append(b_cat)
        widths.append(sum(n_pads))
        return len(weights) - 1, len(biases) - 1, n_pads

    prev = input_dim

    # Head: Dropout(id) -> Linear (+ folded BN) -> Tanh -> Dropout(id)
    w, b, g, be, m, v = (next(it) for _ in range(6))
    wh, bh = fold(w, b, g, be, m, v)
    widx, brow, (n_pad,) = add([wh], [bh], prev)
    head = (widx, brow, n_pad)
    prev = w.shape[1]

    # Residual blocks
    blocks = []
    for has_ds in block_has_downsample:
        w, b, g, be, m, v = (next(it) for _ in range(6))
        n = w.shape[1]
        wf, bf = fold(w, b, g, be, m, v)
        if has_ds:
            wd, bd = next(it), next(it)
            widx, brow, (n_pad, _) = add([wf, wd], [bf, bd], prev)   # fused [K, 2N]
            blocks.append({"fused": (widx, brow, n_pad), "fc1": None})
        else:
            widx, brow, (n_pad,) = add([wf], [bf], prev)
            blocks.append({"fused": None, "fc1": (widx, brow, n_pad)})
        prev = n

    # Final Linear
    wfin, bfin = next(it), next(it)
    widx, brow, (n_pad,) = add([wfin], [bfin], prev)
    final = (widx, brow, n_pad)

    d_max = max(widths)
    bias_slab = jnp.concatenate([_pad2(b, 1, d_max) for b in biases], axis=0)

    plan = {"head": head, "blocks": blocks, "final": final,
            "n_weights": len(weights)}
    return weights, bias_slab, plan, _round_up(input_dim, LANE), final[2]


# ----------------------------------------------------------------------------
# Shared forward math on packed/folded params (used by kernel + plumbing check)
# ----------------------------------------------------------------------------
def _packed_forward_math(x, load_w, bias_slab, plan):
    """`load_w(i)` returns the i-th packed weight (already in the matmul dtype)."""

    def linear(h, lin):
        widx, brow, n_pad = lin
        w = load_w(widx)
        y = jnp.dot(h.astype(w.dtype), w, preferred_element_type=jnp.float32)
        return y + bias_slab[brow:brow + 1, :n_pad]

    h = jnp.tanh(linear(x, plan["head"]))                          # head
    for blk in plan["blocks"]:                                     # residual blocks
        if blk["fused"] is not None:                               # fc1 ⊕ downsample fused
            widx, brow, n_pad = blk["fused"]
            w = load_w(widx)
            y = jnp.dot(h.astype(w.dtype), w, preferred_element_type=jnp.float32)
            y = y + bias_slab[brow:brow + 1, :2 * n_pad]
            o = jnp.maximum(y[:, :n_pad], 0.0)                     # fc1+BN, ReLU, Dropout(id)
            h = jnp.maximum(o + y[:, n_pad:2 * n_pad], 0.0)        # + downsample(x), ReLU
        else:
            o = jnp.maximum(linear(h, blk["fc1"]), 0.0)
            h = jnp.maximum(o + h, 0.0)
    return linear(h, plan["final"])                                # final Linear


def make_combined_classifier_kernel(plan):
    n_w = plan["n_weights"]

    def kernel(x_ref, b_ref, *rest):
        w_refs, out_ref = rest[:n_w], rest[n_w]
        bias = b_ref[...]                                          # tiny slab; load once
        # Point-of-use weight loads keep live ranges short.
        out_ref[...] = _packed_forward_math(
            x_ref[...], lambda i: w_refs[i][...], bias, plan).astype(out_ref.dtype)

    return kernel


# ----------------------------------------------------------------------------
# Batch tiling: big tiles (amortize per-step overhead), bounded padding waste,
# and >=2 tiles when possible so both v7x TensorCores get work.
# ----------------------------------------------------------------------------
def _choose_batch_tiling(batch, batch_tile, cap=1024):
    if batch_tile is not None:
        bt = _round_up(batch_tile, SUBLANE)
        return bt, _round_up(batch, bt)
    b_min = _round_up(batch, SUBLANE)
    if b_min <= cap:
        n_tiles = 2 if b_min >= 2 * SUBLANE else 1
        bt = _round_up(-(-batch // n_tiles), SUBLANE)
        return bt, n_tiles * bt
    bt = cap
    while bt > 2 * SUBLANE and (_round_up(batch, bt) - batch) > _round_up(batch, bt) // 8:
        bt //= 2
    return bt, _round_up(batch, bt)


# ----------------------------------------------------------------------------
# Public builder: packs params once, returns a jitted forward(x).
# ----------------------------------------------------------------------------
def make_combined_classifier(params, block_has_downsample, input_dim, *,
                             dot_dtype=jnp.bfloat16, batch_tile=None):
    out_dim = params[-1].shape[1]
    weights, bias_slab, plan, d_in_pad, d_out_pad = pack_params(
        params, block_has_downsample, input_dim, dot_dtype)
    kernel = make_combined_classifier_kernel(plan)

    weight_bytes = sum(w.size * w.dtype.itemsize for w in weights)
    bias_bytes = int(bias_slab.size * bias_slab.dtype.itemsize)
    io_itemsize = jnp.dtype(dot_dtype).itemsize
    d_max = max(w.shape[1] for w in weights)

    @jax.jit
    def forward(x):
        batch = x.shape[0]
        bt, b_pad = _choose_batch_tiling(batch, batch_tile)
        x_pad = _pad2(x.astype(dot_dtype), b_pad, d_in_pad)        # bf16 x stream

        # Explicit scoped-VMEM budget: resident operands are double-buffered by
        # the pipeline; add live f32 activations + slack.  (v5e's default
        # scoped limit is only 16 MiB.)
        vmem_needed = (2 * (weight_bytes + bias_bytes)
                       + 2 * bt * (d_in_pad + d_out_pad) * io_itemsize
                       + 6 * bt * d_max * 4)
        vmem_limit = int(min(vmem_needed * 1.5 + (2 << 20), 64 << 20))

        flops = int(2 * b_pad * sum(w.shape[0] * w.shape[1] for w in weights))
        bytes_accessed = int((x_pad.size + b_pad * d_out_pad) * io_itemsize
                             + bias_bytes + weight_bytes)
        transcendentals = int(b_pad * weights[0].shape[1])          # head tanh

        out = pl.pallas_call(
            kernel,
            out_shape=jax.ShapeDtypeStruct((b_pad, d_out_pad), dot_dtype),
            grid=(b_pad // bt,),
            in_specs=[pl.BlockSpec((bt, d_in_pad), lambda i: (i, 0)),    # x tile (bf16)
                      pl.BlockSpec(bias_slab.shape, lambda i: (0, 0))]   # bias slab (resident)
                     + [pl.BlockSpec(w.shape, lambda i: (0, 0))          # weights (resident)
                        for w in weights],
            out_specs=pl.BlockSpec((bt, d_out_pad), lambda i: (i, 0)),   # lane-dense bf16 out
            compiler_params=pltpu.CompilerParams(
                dimension_semantics=("parallel",),                       # megacore sharding
                vmem_limit_bytes=vmem_limit),
            cost_estimate=pl.CostEstimate(flops=flops,
                                          transcendentals=transcendentals,
                                          bytes_accessed=bytes_accessed),
        )(x_pad, bias_slab, *weights)

        return out[:batch, :out_dim].astype(jnp.float32)

    return forward, (weights, bias_slab, plan, d_in_pad, d_out_pad)


# ----------------------------------------------------------------------------
# Synthetic init + module-faithful reference
# ----------------------------------------------------------------------------
def init_params(key, input_dim, hidden_dims, output_dim):
    """Deterministic synthetic init mirroring the module's parameter shapes."""
    keys = iter(jax.random.split(key, 128))

    def kaiming(fan_in, fan_out):          # kaiming_normal_, mode='fan_in'
        return jnp.sqrt(2.0 / fan_in) * jax.random.normal(
            next(keys), (fan_in, fan_out), jnp.float32)

    def bias(n):
        return 0.1 * jax.random.normal(next(keys), (1, n), jnp.float32)

    def bn(n):
        gamma = jax.random.uniform(next(keys), (1, n), jnp.float32, 0.5, 1.5)
        beta = 0.1 * jax.random.normal(next(keys), (1, n), jnp.float32)
        mean = 0.1 * jax.random.normal(next(keys), (1, n), jnp.float32)
        var = jax.random.uniform(next(keys), (1, n), jnp.float32, 0.5, 1.5)
        return [gamma, beta, mean, var]

    params, block_has_downsample = [], []
    prev = input_dim
    params += [kaiming(prev, hidden_dims[0]), bias(hidden_dims[0])]
    params += bn(hidden_dims[0])
    prev = hidden_dims[0]
    for h in hidden_dims[1:]:
        params += [kaiming(prev, h), bias(h)]
        params += bn(h)
        has_ds = prev != h
        block_has_downsample.append(has_ds)
        if has_ds:
            params += [kaiming(prev, h), bias(h)]
        prev = h
    params += [kaiming(prev, output_dim), bias(output_dim)]
    return params, block_has_downsample


def reference_forward(x, params, block_has_downsample):
    """Pure-JAX, f32, unfolded-BN reference (exact eval-mode module semantics)."""
    it = iter(params)
    w, b, g, be, m, v = (next(it) for _ in range(6))
    h = jnp.tanh(_bn_eval(x @ w + b, g, be, m, v))
    for has_ds in block_has_downsample:
        w, b, g, be, m, v = (next(it) for _ in range(6))
        o = jnp.maximum(_bn_eval(h @ w + b, g, be, m, v), 0.0)
        if has_ds:
            wd, bd = next(it), next(it)
            h = h @ wd + bd
        h = jnp.maximum(o + h, 0.0)
    wf, bf = next(it), next(it)
    return h @ wf + bf


if __name__ == "__main__":
    key = jax.random.PRNGKey(0)
    kx, kp = jax.random.split(key)

    batch, input_dim = 8, 32
    hidden_dims = [64, 32]
    output_dim = 2

    x = jax.random.normal(kx, (batch, input_dim), jnp.float32)
    params, block_has_downsample = init_params(kp, input_dim, hidden_dims, output_dim)

    forward, packed = make_combined_classifier(params, block_has_downsample, input_dim)
    out = jax.block_until_ready(forward(x))
    assert out.shape == (batch, output_dim)

    # Tight check: the exact packed math (folded BN, fused fc1+downsample,
    # bf16 operands, bf16 output round-trip) replayed in plain JAX -> validates
    # the Pallas plumbing.
    weights, bias_slab, plan, d_in_pad, _ = packed
    _, b_pad = _choose_batch_tiling(batch, None)
    x_pad = _pad2(x.astype(jnp.bfloat16), b_pad, d_in_pad)
    ref_packed = _packed_forward_math(x_pad, lambda i: weights[i], bias_slab, plan)
    ref_packed = ref_packed[:batch, :output_dim].astype(jnp.bfloat16).astype(jnp.float32)
    assert jnp.allclose(out, ref_packed, atol=2e-2, rtol=2e-2), \
        "Pallas kernel mismatch vs matched-precision JAX replay"

    # Structural check vs exact f32 eval-mode module semantics (loose tolerance
    # accounts for the intentional bf16 operand / output precision trade).
    ref_module = reference_forward(x, params, block_has_downsample)
    assert jnp.allclose(out, ref_module, atol=1e-1, rtol=1e-1), \
        "Pallas kernel mismatch vs f32 module reference"

    print("KERNEL_OK")
</pallas_src>

<mosaic_0001>
module attributes {stable_mosaic.version = 11 : i64} {
  func.func @kernel(%arg0: i32, %arg1: memref<8x128xbf16, #tpu.memory_space<vmem>>, %arg2: memref<3x256xf32, #tpu.memory_space<vmem>>, %arg3: memref<128x128xbf16, #tpu.memory_space<vmem>>, %arg4: memref<128x256xbf16, #tpu.memory_space<vmem>>, %arg5: memref<128x128xbf16, #tpu.memory_space<vmem>>, %arg6: memref<8x128xbf16, #tpu.memory_space<vmem>>) attributes {dimension_semantics = [#tpu.dimension_semantics<parallel>], iteration_bounds = array<i64: 1>, scalar_prefetch = 0 : i64, scratch_operands = 0 : i64, tpu.core_type = #tpu.core_type<tc>, window_params = [{transform_indices = @transform_0, window_bounds = array<i64: 8, 128>}, {pipeline_mode = #tpu.pipeline_mode<synchronous>, transform_indices = @transform_1, window_bounds = array<i64: 3, 256>}, {pipeline_mode = #tpu.pipeline_mode<synchronous>, transform_indices = @transform_2, window_bounds = array<i64: 128, 128>}, {pipeline_mode = #tpu.pipeline_mode<synchronous>, transform_indices = @transform_3, window_bounds = array<i64: 128, 256>}, {pipeline_mode = #tpu.pipeline_mode<synchronous>, transform_indices = @transform_4, window_bounds = array<i64: 128, 128>}, {transform_indices = @transform_5, window_bounds = array<i64: 8, 128>}]} {
    %c0 = arith.constant 0 : index
    %c0_0 = arith.constant 0 : index
    %0 = vector.load %arg2[%c0, %c0_0] : memref<3x256xf32, #tpu.memory_space<vmem>>, vector<3x256xf32>
    %c0_1 = arith.constant 0 : index
    %c0_2 = arith.constant 0 : index
    %1 = vector.load %arg1[%c0_1, %c0_2] : memref<8x128xbf16, #tpu.memory_space<vmem>>, vector<8x128xbf16>
    %c0_3 = arith.constant 0 : index
    %c0_4 = arith.constant 0 : index
    %2 = vector.load %arg3[%c0_3, %c0_4] : memref<128x128xbf16, #tpu.memory_space<vmem>>, vector<128x128xbf16>
    %cst = arith.constant dense<0.000000e+00> : vector<8x128xf32>
    %3 = tpu.matmul %1, %2, %cst {dimension_numbers = #tpu.dot_dimension_numbers<[1], [0], [0], [1], [0, 0, 1, 1], [], []>} : vector<8x128xbf16>, vector<128x128xbf16>, vector<8x128xf32> -> vector<8x128xf32>
    %4 = vector.extract_strided_slice %0 {offsets = [0, 0], sizes = [1, 128], strides = [1, 1]} : vector<3x256xf32> to vector<1x128xf32>
    %5 = vector.broadcast %4 : vector<1x128xf32> to vector<8x128xf32>
    %6 = arith.addf %3, %5 : vector<8x128xf32>
    %7 = math.tanh %6 : vector<8x128xf32>
    %c0_5 = arith.constant 0 : index
    %c0_6 = arith.constant 0 : index
    %8 = vector.load %arg4[%c0_5, %c0_6] : memref<128x256xbf16, #tpu.memory_space<vmem>>, vector<128x256xbf16>
    %9 = arith.truncf %7 : vector<8x128xf32> to vector<8x128xbf16>
    %cst_7 = arith.constant dense<0.000000e+00> : vector<8x256xf32>
    %10 = tpu.matmul %9, %8, %cst_7 {dimension_numbers = #tpu.dot_dimension_numbers<[1], [0], [0], [1], [0, 0, 1, 1], [], []>} : vector<8x128xbf16>, vector<128x256xbf16>, vector<8x256xf32> -> vector<8x256xf32>
    %11 = vector.extract_strided_slice %0 {offsets = [1, 0], sizes = [1, 256], strides = [1, 1]} : vector<3x256xf32> to vector<1x256xf32>
    %12 = vector.broadcast %11 : vector<1x256xf32> to vector<8x256xf32>
    %13 = arith.addf %10, %12 : vector<8x256xf32>
    %14 = vector.extract_strided_slice %13 {offsets = [0, 0], sizes = [8, 128], strides = [1, 1]} : vector<8x256xf32> to vector<8x128xf32>
    %cst_8 = arith.constant 0.000000e+00 : f32
    %15 = vector.broadcast %cst_8 : f32 to vector<8x128xf32>
    %16 = arith.maximumf %14, %15 : vector<8x128xf32>
    %17 = vector.extract_strided_slice %13 {offsets = [0, 128], sizes = [8, 128], strides = [1, 1]} : vector<8x256xf32> to vector<8x128xf32>
    %18 = arith.addf %16, %17 : vector<8x128xf32>
    %cst_9 = arith.constant 0.000000e+00 : f32
    %19 = vector.broadcast %cst_9 : f32 to vector<8x128xf32>
    %20 = arith.maximumf %18, %19 : vector<8x128xf32>
    %c0_10 = arith.constant 0 : index
    %c0_11 = arith.constant 0 : index
    %21 = vector.load %arg5[%c0_10, %c0_11] : memref<128x128xbf16, #tpu.memory_space<vmem>>, vector<128x128xbf16>
    %22 = arith.truncf %20 : vector<8x128xf32> to vector<8x128xbf16>
    %cst_12 = arith.constant dense<0.000000e+00> : vector<8x128xf32>
    %23 = tpu.matmul %22, %21, %cst_12 {dimension_numbers = #tpu.dot_dimension_numbers<[1], [0], [0], [1], [0, 0, 1, 1], [], []>} : vector<8x128xbf16>, vector<128x128xbf16>, vector<8x128xf32> -> vector<8x128xf32>
    %24 = vector.extract_strided_slice %0 {offsets = [2, 0], sizes = [1, 128], strides = [1, 1]} : vector<3x256xf32> to vector<1x128xf32>
    %25 = vector.broadcast %24 : vector<1x128xf32> to vector<8x128xf32>
    %26 = arith.addf %23, %25 : vector<8x128xf32>
    %27 = arith.truncf %26 : vector<8x128xf32> to vector<8x128xbf16>
    %c0_13 = arith.constant 0 : index
    %c0_14 = arith.constant 0 : index
    %28 = vector.load %arg6[%c0_13, %c0_14] : memref<8x128xbf16, #tpu.memory_space<vmem>>, vector<8x128xbf16>
    tpu.vector_store %arg6[%c0_13, %c0_14], %27 {strides = array<i32>} : memref<8x128xbf16, #tpu.memory_space<vmem>>, vector<8x128xbf16>,
    return
  }
  func.func @transform_0(%arg0: i32) -> (i32, i32) {
    %c0_i32 = arith.constant 0 : i32
    %c0_i32_0 = arith.constant 0 : i32
    return %arg0, %c0_i32 : i32, i32
  }
  func.func @transform_1(%arg0: i32) -> (i32, i32) {
    %c0_i32 = arith.constant 0 : i32
    %c0_i32_0 = arith.constant 0 : i32
    %c0_i32_1 = arith.constant 0 : i32
    return %c0_i32, %c0_i32_0 : i32, i32
  }
  func.func @transform_2(%arg0: i32) -> (i32, i32) {
    %c0_i32 = arith.constant 0 : i32
    %c0_i32_0 = arith.constant 0 : i32
    %c0_i32_1 = arith.constant 0 : i32
    return %c0_i32, %c0_i32_0 : i32, i32
  }
  func.func @transform_3(%arg0: i32) -> (i32, i32) {
    %c0_i32 = arith.constant 0 : i32
    %c0_i32_0 = arith.constant 0 : i32
    %c0_i32_1 = arith.constant 0 : i32
    return %c0_i32, %c0_i32_0 : i32, i32
  }
  func.func @transform_4(%arg0: i32) -> (i32, i32) {
    %c0_i32 = arith.constant 0 : i32
    %c0_i32_0 = arith.constant 0 : i32
    %c0_i32_1 = arith.constant 0 : i32
    return %c0_i32, %c0_i32_0 : i32, i32
  }
  func.func @transform_5(%arg0: i32) -> (i32, i32) {
    %c0_i32 = arith.constant 0 : i32
    %c0_i32_0 = arith.constant 0 : i32
    return %arg0, %c0_i32 : i32, i32
  }
}

</mosaic_0001>

<bundles_post_ra>
// kernel: forward.1
= control target key start
LH: loop header
LB: loop body
LE: loop exit
PB: predicated region body
PF: predicated region fallthrough
CT: control target
= control target key end

     0   :  { %10 = vsyncpa [#allocation3], 0  ;;  %s734_s0 = inlined_call_operand.vmem [shape: bf16[8,128], index: 0, kind: input, shape index: {}]   ;;  %s735_s1 = inlined_call_operand.vmem [shape: f32[3,256], index: 1, kind: input, shape index: {}]   ;;  %s736_s2 = inlined_call_operand.hbm [shape: bf16[128,128], index: 2, kind: input, shape index: {}]   ;;  %s737_s3 = inlined_call_operand.hbm [shape: bf16[128,256], index: 3, kind: input, shape index: {}]   ;;  %s738_s4 = inlined_call_operand.hbm [shape: bf16[128,128], index: 4, kind: input, shape index: {}]   ;;  %s739_s5 = inlined_call_operand.vmem [shape: bf16[8,128], index: 5, kind: output, shape index: {}]  }
   0x1   :  { %11 = vsyncpa [#allocation5], 0  ;;  %s656_s18 = smov [#allocation4]  }
   0x2   :  { %s33_s19 = sshll.u32 %s656_s18, 4  ;;  %s34_s19 = int_to_ptr.vmem [resolvable:$true] %s33_s19 }
   0x3   :  { %s600_s20 = scalar_lea.vmem %s34_s19, 2048  ;;  %p605_p1 = scmp.lt.s32.totalorder %s34_s19, %s34_s19 }
   0x4   :  { %p601_p0 = scmp.ne.s32.totalorder %s34_s19, %s600_s20  ;;  %p606_p2 = scmp.lt.s32.totalorder %s600_s20, %s600_s20 }
   0x6   :  { %p607_p3 = por %p606_p2, %p605_p1 }
   0x8   :  { %p608_p4 = pnand %p607_p3, %p601_p0 }
   0xa   :  { %611 = shalt.err (!%p608_p4)
}
   0xb   :  { %s657_s21 = smov 128   ;;  %s658_s22 = smov 8  }
   0xc   :  { %39 = dma.hbm_to_vmem [thread:$0]  %s737_s3, 2048, %s34_s19, [#allocation5], %s657_s21, %s657_s21, %s658_s22  }
   0xd   :  { %s659_s25 = smov [#allocation2]  }
   0xe   :  { %s21_s26 = sshll.u32 %s659_s25, 4  ;;  %s22_s26 = int_to_ptr.vmem [resolvable:$true] %s21_s26 }
   0xf   :  { %s620_s27 = scalar_lea.vmem %s22_s26, 1024  ;;  %p625_p6 = scmp.lt.s32.totalorder %s22_s26, %s22_s26 }
  0x10   :  { %p621_p5 = scmp.ne.s32.totalorder %s22_s26, %s620_s27  ;;  %p626_p7 = scmp.lt.s32.totalorder %s620_s27, %s620_s27 }
  0x12   :  { %p627_p8 = por %p626_p7, %p625_p6 }
  0x14   :  { %p628_p9 = pnand %p627_p8, %p621_p5 }
  0x16   :  { %631 = shalt.err (!%p628_p9)
}
  0x17   :  { %s660_s28 = smov 64   ;;  %s661_s29 = smov 4  }
  0x18   :  { %27 = dma.hbm_to_vmem [thread:$0]  %s736_s2, 1024, %s22_s26, [#allocation3], %s660_s28, %s660_s28, %s661_s29  }
  0x19   :  { %s662_s7 = smov [#allocation6]  }
  0x1a   :  { %s45_s8 = sshll.u32 %s662_s7, 4  ;;  %s46_s8 = int_to_ptr.vmem [resolvable:$true] %s45_s8 }
  0x1b   :  { %s640_s3 = scalar_lea.vmem %s46_s8, 1024  ;;  %p645_p11 = scmp.lt.s32.totalorder %s46_s8, %s46_s8 }
  0x1c   :  { %p641_p10 = scmp.ne.s32.totalorder %s46_s8, %s640_s3  ;;  %p646_p12 = scmp.lt.s32.totalorder %s640_s3, %s640_s3 }
  0x1e   :  { %p647_p13 = por %p646_p12, %p645_p11 }
  0x20   :  { %p648_p0 = pnand %p647_p13, %p641_p10 }
  0x22   :  { %651 = shalt.err (!%p648_p0)
}
  0x23   :  { %51 = dma.hbm_to_vmem [thread:$0]  %s738_s4, 1024, %s46_s8, [#allocation5], %s660_s28, %s660_s28, %s661_s29  }
  0x24   :  { %652 = dma.done.wait [#allocation3], 1024  }
  0x25   :  { %653 = vsyncadd [#allocation3], 4294966272 }
  0x26   :  { %654 = dma.done.wait [#allocation5], 3072  }
  0x27   :  { %655 = vsyncadd [#allocation5], 4294964224  ;;  %v663_v0 = vmov 0.0   ;;  %vm664_vm0 = vmmov 0   ;;  %v550_v1 = vld [vmem:[#allocation2 + $0x38] sm:$0xff]   ;;  %v551_v2 = vld [vmem:[#allocation2 + $0x30] sm:$0xff]   ;;  %v80_v32 = vlaneseq }
  0x28   :  { %500 = vmatprep.subr.bf16.mxu0 %v663_v0  ;;  %516 = vmatprep.mubr.msk.bf16.mxu0 %vm664_vm0, %v663_v0  ;;  %v552_v3 = vld [vmem:[#allocation2 + $0x28] sm:$0xff]   ;;  %v558_v4 = vld [vmem:[#allocation4 + $0x74] ss:$8 sps:$4 sm:$0xff]   ;;  %v560_v5 = vld [vmem:[#allocation4 + $0x70] ss:$8 sps:$4 sm:$0xff]   ;;  %v665_v24 = vmov 0  }
  0x29   :  { %501 = vmatpush3.bf16.msra.mxu0 %v550_v1  ;;  %v553_v6 = vld [vmem:[#allocation2 + $0x20] sm:$0xff]   ;;  %289 = vmatprep.subr.bf16.mxu1 %v558_v4  ;;  %v554_v9 = vld [vmem:[#allocation2 + $0x18] sm:$0xff]   ;;  %v555_v13 = vld [vmem:[#allocation2 + $0x10] sm:$0xff]   ;;  %v81_v33 = vshrl.u32 %v80_v32, 7 }
  0x2a   :  { %502 = vmatprep.subr.bf16.mxu0 %v663_v0  ;;  %v561_v7 = vld [vmem:[#allocation4 + $0x64] ss:$8 sps:$4 sm:$0xff]   ;;  %290 = vmatpush1.bf16.msra.mxu1 %v560_v5  ;;  %v563_v8 = vld [vmem:[#allocation4 + $0x60] ss:$8 sps:$4 sm:$0xff]   ;;  %v564_v10 = vld [vmem:[#allocation4 + $0x54] ss:$8 sps:$4 sm:$0xff]  }
  0x2b   :  { %291 = vmatprep.subr.bf16.mxu1 %v561_v7  ;;  %v566_v11 = vld [vmem:[#allocation4 + $0x50] ss:$8 sps:$4 sm:$0xff]   ;;  %v567_v12 = vld [vmem:[#allocation4 + $0x44] ss:$8 sps:$4 sm:$0xff]   ;;  %v63_v16 = vld [vmem:[%s734_s0] sm:$0xf]  ;;  %321 = vmatprep.mubr.bf16.mxu1 %v665_v24 }
  0x2c   :  { %v556_v14 = vld [vmem:[#allocation2 + $0x8] sm:$0xff]   ;;  %v557_v15 = vld [vmem:[#allocation2] sm:$0xff]   ;;  %v570_v18 = vld [vmem:[#allocation4 + $0x34] ss:$8 sps:$4 sm:$0xff]   ;;  %v82_v34 = vsub.s32 0, %v81_v33  ;;  %v193_v47 = vsub.s32 1, %v81_v33 }
  0x2d   :  { %503 = vmatpush3.bf16.msra.mxu0 %v551_v2  ;;  %v569_v17 = vld [vmem:[#allocation4 + $0x40] ss:$8 sps:$4 sm:$0xff]   ;;  %v572_v19 = vld [vmem:[#allocation4 + $0x30] ss:$8 sps:$4 sm:$0xff]   ;;  %v573_v20 = vld [vmem:[#allocation4 + $0x24] ss:$8 sps:$4 sm:$0xff]  }
  0x2e   :  { %504 = vmatprep.subr.bf16.mxu0 %v663_v0  ;;  %292 = vmatpush1.bf16.msra.mxu1 %v563_v8  ;;  %v575_v21 = vld [vmem:[#allocation4 + $0x20] ss:$8 sps:$4 sm:$0xff]   ;;  %v576_v22 = vld [vmem:[#allocation4 + $0x14] ss:$8 sps:$4 sm:$0xff]   ;;  %v578_v23 = vld [vmem:[#allocation4 + $0x10] ss:$8 sps:$4 sm:$0xff]  }
  0x2f   :  { %293 = vmatprep.subr.bf16.mxu1 %v564_v10  ;;  %v579_v25 = vld [vmem:[#allocation4 + $0x4] ss:$8 sps:$4 sm:$0xff]   ;;  %v581_v26 = vld [vmem:[#allocation4] ss:$8 sps:$4 sm:$0xff]   ;;  %v582_v27 = vld [vmem:[#allocation6 + $0x38] sm:$0xff]   ;;  %v197_v48 = vsub.s32 5, %v81_v33 }
  0x30   :  { %v583_v28 = vld [vmem:[#allocation6 + $0x30] sm:$0xff]   ;;  %v584_v29 = vld [vmem:[#allocation6 + $0x28] sm:$0xff]   ;;  %v585_v30 = vld [vmem:[#allocation6 + $0x20] sm:$0xff]   ;;  %v352_v63 = vsub.s32 2, %v81_v33 }
  0x31   :  { %505 = vmatpush3.bf16.msra.mxu0 %v552_v3  ;;  %v586_v31 = vld [vmem:[#allocation6 + $0x18] sm:$0xff]   ;;  %v62_v35 = vld [vmem:[%s735_s1] sm:$0x77]  ;;  %v587_v44 = vld [vmem:[#allocation6 + $0x10] sm:$0xff]  }
  0x32   :  { %506 = vmatprep.subr.bf16.mxu0 %v663_v0  ;;  %294 = vmatpush1.bf16.msra.mxu1 %v566_v11  ;;  %v83_v36 = vrot.slane %v62_v35, %v82_v34  ;;  %v588_v45 = vld [vmem:[#allocation6 + $0x8] sm:$0xff]   ;;  %v589_v46 = vld [vmem:[#allocation6] sm:$0xff]   ;;  %v194_v49 = vrot.slane %v62_v35, %v193_v47  ;;  %v198_v50 = vrot.slane %v62_v35, %v197_v48 }
  0x33   :  { %295 = vmatprep.subr.bf16.mxu1 %v567_v12 }
  0x34   :  { %v204_v51 = vrot.slane %v194_v49, %v193_v47  ;;  %v208_v52 = vrot.slane %v198_v50, %v193_v47 }
  0x35   :  { %507 = vmatpush3.bf16.msra.mxu0 %v553_v6 }
  0x36   :  { %508 = vmatprep.subr.bf16.mxu0 %v663_v0  ;;  %296 = vmatpush1.bf16.msra.mxu1 %v569_v17 }
  0x37   :  { %297 = vmatprep.subr.bf16.mxu1 %v570_v18 }
  0x39   :  { %509 = vmatpush3.bf16.msra.mxu0 %v554_v9 }
  0x3a   :  { %510 = vmatprep.subr.bf16.mxu0 %v663_v0  ;;  %298 = vmatpush1.bf16.msra.mxu1 %v572_v19 }
  0x3b   :  { %299 = vmatprep.subr.bf16.mxu1 %v573_v20 }
  0x3d   :  { %511 = vmatpush3.bf16.msra.mxu0 %v555_v13 }
  0x3e   :  { %512 = vmatprep.subr.bf16.mxu0 %v663_v0  ;;  %300 = vmatpush1.bf16.msra.mxu1 %v575_v21 }
  0x3f   :  { %301 = vmatprep.subr.bf16.mxu1 %v576_v22 }
  0x41   :  { %513 = vmatpush3.bf16.msra.mxu0 %v556_v14 }
  0x42   :  { %514 = vmatprep.subr.bf16.mxu0 %v663_v0  ;;  %302 = vmatpush1.bf16.msra.mxu1 %v578_v23 }
  0x43   :  { %303 = vmatprep.subr.bf16.mxu1 %v579_v25 }
  0x45   :  { %515 = vmatpush3.bf16.msra.mxu0 %v557_v15 }
  0x46   :  { %520 = vmatprep.subr.bf16.mxu0 %v663_v0  ;;  %304 = vmatpush1.bf16.msra.mxu1 %v581_v26 }
  0x48   :  { %517 = vmatmul.mubr.bf16.vlgmr.msra.gmra.mxu0 %v63_v16 }
  0x49   :  { %536 = vmatprep.mubr.msk.bf16.mxu0 %vm664_vm0, %v663_v0  ;;  %521 = vmatpush3.bf16.msra.mxu0 %v582_v27 }
  0x4a   :  { %522 = vmatprep.subr.bf16.mxu0 %v663_v0 }
  0x4d   :  { %523 = vmatpush3.bf16.msra.mxu0 %v583_v28 }
  0x4e   :  { %524 = vmatprep.subr.bf16.mxu0 %v663_v0 }
  0x51   :  { %525 = vmatpush3.bf16.msra.mxu0 %v584_v29 }
  0x52   :  { %526 = vmatprep.subr.bf16.mxu0 %v663_v0 }
  0x55   :  { %527 = vmatpush3.bf16.msra.mxu0 %v585_v30 }
  0x56   :  { %528 = vmatprep.subr.bf16.mxu0 %v663_v0 }
  0x59   :  { %529 = vmatpush3.bf16.msra.mxu0 %v586_v31 }
  0x5a   :  { %530 = vmatprep.subr.bf16.mxu0 %v663_v0 }
  0x5d   :  { %531 = vmatpush3.bf16.msra.mxu0 %v587_v44 }
  0x5e   :  { %532 = vmatprep.subr.bf16.mxu0 %v663_v0 }
  0x61   :  { %533 = vmatpush3.bf16.msra.mxu0 %v588_v45 }
  0x62   :  { %534 = vmatprep.subr.bf16.mxu0 %v663_v0  ;;  %v353_v0 = vrot.slane %v62_v35, %v352_v63 }
  0x65   :  { %535 = vmatpush3.bf16.msra.mxu0 %v589_v46 }
 0x108   :  { %v166_v37 = vpop.f32.mrf.mxu0 }
 0x109   :  { %v167_v38 = vadd.f32 %v166_v37, %v83_v36 }
 0x10a   :  { %v518_v39 = vpop.f32.mrf.mxu0 }
 0x10b   :  { %590 = vtanh.f32 %v167_v38 }
 0x10c   :  { %v169_v40 = vpop.f32.mrf.mxu0 }
 0x10e   :  { %v519_v41 = vpop.f32.mrf.mxu0 }
 0x118   :  { %v591_v42 = vpop.eup %590 }
 0x119   :  { %v189_v43 = vpack.c.bf16 %v591_v42, %v591_v42 }
 0x11b   :  { %322 = vmatmul.mubr.bf16.vlgmr.msra.gmra.mxu1 %v189_v43 }
 0x1db   :  { %v323_v53 = vpop.f32.mrf.mxu1 }
 0x1dc   :  { %v324_v54 = vadd.f32 %v323_v53, %v204_v51 }
 0x1dd   :  { %v325_v55 = vpop.f32.mrf.mxu1 }
 0x1de   :  { %v330_v56 = vmax.f32 %v324_v54, 0.0  ;;  %v326_v57 = vadd.f32 %v325_v55, %v208_v52 }
 0x1df   :  { %v327_v58 = vpop.f32.mrf.mxu1 }
 0x1e0   :  { %v331_v59 = vadd.f32 %v330_v56, %v326_v57 }
 0x1e1   :  { %v328_v60 = vpop.f32.mrf.mxu1 }
 0x1e2   :  { %v332_v61 = vmax.f32 %v331_v59, 0.0 }
 0x1e4   :  { %v349_v62 = vpack.c.bf16 %v332_v61, %v332_v61 }
 0x1e6   :  { %537 = vmatmul.mubr.bf16.vlgmr.msra.gmra.mxu0 %v349_v62 }
 0x2a6   :  { %v436_v1 = vpop.f32.mrf.mxu0 }
 0x2a7   :  { %v437_v2 = vadd.f32 %v436_v1, %v353_v0 }
 0x2a8   :  { %v538_v3 = vpop.f32.mrf.mxu0 }
 0x2a9   :  { %v442_v4 = vpack.c.bf16 %v437_v2, %v437_v2 }
 0x2aa   :  { %v439_v5 = vpop.f32.mrf.mxu0 }
 0x2ab   :  { %443 = vst [vmem:[%s739_s5] sm:$0xf] %v442_v4 }
 0x2ac   :  { %v539_v6 = vpop.f32.mrf.mxu0 }
 0x2ad   :  { %448 = vsyncpa [#allocation3], 1 }
 0x2ae   :  { %449 = vsyncpa [#allocation5], 1 }

</bundles_post_ra>
